<compile_context>
chip_gen: v5e
topology: v5e:2x2
jax: 0.10.0
libtpu: 0.0.40
codegen_flags: <defaults>
</compile_context>

<pallas_src>
import functools

import jax
import jax.numpy as jnp
from jax.experimental import pallas as pl
from jax.experimental.pallas import tpu as pltpu

HIDDEN = 128  # fixed by the module: nn.Linear(input_dim, 128)


def _round_up(x, m):
    return ((x + m - 1) // m) * m


def travel_mlp_kernel(x_ref, w1_ref, b1_ref, w2_ref, b2_ref, o_ref, acc_ref):
    """One (batch_tile, k_tile) grid step of y = relu(x @ W1 + b1) @ W2 + b2."""
    k = pl.program_id(1)

    @pl.when(k == 0)
    def _():
        acc_ref[...] = jnp.zeros_like(acc_ref)

    # Partial hidden-layer accumulation on the MXU (bf16 inputs, f32 accumulator).
    acc_ref[...] += jnp.dot(
        x_ref[...], w1_ref[...], preferred_element_type=jnp.float32
    )

    @pl.when(k == pl.num_programs(1) - 1)
    def _():
        # Finalize: bias + ReLU in f32 on the VPU, second matmul on the MXU,
        # lane-dense (padded-to-128) f32 store.
        h = jnp.maximum(acc_ref[...] + b1_ref[...], 0.0)
        y = jnp.dot(
            h.astype(w2_ref.dtype), w2_ref[...], preferred_element_type=jnp.float32
        )
        o_ref[...] = (y + b2_ref[...]).astype(o_ref.dtype)


@functools.partial(jax.jit, static_argnames=("tb", "tk", "compute_dtype"))
def travel_model_forward(x, w1, b1, w2, b2, *, tb=256, tk=512,
                         compute_dtype=jnp.bfloat16):
    """x: (B, input_dim) f32. Returns logits (B, output_dim) f32.

    tb: batch tile (rounded to a multiple of 8, clamped to the padded batch).
    tk: input_dim (reduction) tile (multiple of 128, clamped to the padded vocab).
    """
    B, D = x.shape
    H = w1.shape[1]
    C = w2.shape[1]
    assert H == HIDDEN

    # Tile / padding bookkeeping. Padded rows/cols are zero and sliced off at the end.
    Cp = _round_up(C, 128)             # lane-dense output slab
    tb = min(tb, _round_up(B, 8))      # batch tile, multiple of 8
    Bp = _round_up(B, tb)
    tk = min(tk, _round_up(D, 128))    # K tile, multiple of 128
    Dp = _round_up(D, tk)

    cd = compute_dtype
    xp = jnp.zeros((Bp, Dp), cd).at[:B, :D].set(x.astype(cd))
    w1p = jnp.zeros((Dp, H), cd).at[:D, :].set(w1.astype(cd))
    b1p = b1.reshape(1, H).astype(jnp.float32)
    w2p = jnp.zeros((H, Cp), cd).at[:, :C].set(w2.astype(cd))
    b2p = jnp.zeros((1, Cp), jnp.float32).at[:, :C].set(
        b2.reshape(1, C).astype(jnp.float32)
    )

    grid = (Bp // tb, Dp // tk)

    itemsize = jnp.dtype(cd).itemsize
    cost = pl.CostEstimate(
        flops=2 * Bp * Dp * H + 2 * Bp * H * Cp,
        transcendentals=0,
        bytes_accessed=(Bp * Dp + Dp * H + H * Cp) * itemsize
        + (H + Cp + Bp * Cp) * 4,
    )

    out = pl.pallas_call(
        travel_mlp_kernel,
        out_shape=jax.ShapeDtypeStruct((Bp, Cp), jnp.float32),
        grid_spec=pltpu.PrefetchScalarGridSpec(
            num_scalar_prefetch=0,
            grid=grid,
            in_specs=[
                pl.BlockSpec((tb, tk), lambda i, k: (i, k)),   # x tile (streamed)
                pl.BlockSpec((tk, H), lambda i, k: (k, 0)),    # W1 tile (streamed)
                pl.BlockSpec((1, H), lambda i, k: (0, 0)),     # b1 (resident)
                pl.BlockSpec((H, Cp), lambda i, k: (0, 0)),    # W2 (resident)
                pl.BlockSpec((1, Cp), lambda i, k: (0, 0)),    # b2 (resident)
            ],
            out_specs=pl.BlockSpec((tb, Cp), lambda i, k: (i, 0)),
            scratch_shapes=[pltpu.VMEM((tb, H), jnp.float32)],  # hidden accumulator
        ),
        compiler_params=pltpu.CompilerParams(
            dimension_semantics=("parallel", "arbitrary"),
        ),
        cost_estimate=cost,
    )(xp, w1p, b1p, w2p, b2p)

    return out[:B, :C]


def init_params(key, input_dim, hidden_dim, output_dim):
    """Deterministic init mirroring nn.Linear default (uniform ±1/sqrt(fan_in))."""
    k1, k2, k3, k4 = jax.random.split(key, 4)
    lim1 = 1.0 / jnp.sqrt(input_dim)
    lim2 = 1.0 / jnp.sqrt(hidden_dim)
    w1 = jax.random.uniform(k1, (input_dim, hidden_dim), jnp.float32, -lim1, lim1)
    b1 = jax.random.uniform(k2, (1, hidden_dim), jnp.float32, -lim1, lim1)
    w2 = jax.random.uniform(k3, (hidden_dim, output_dim), jnp.float32, -lim2, lim2)
    b2 = jax.random.uniform(k4, (1, output_dim), jnp.float32, -lim2, lim2)
    return w1, b1, w2, b2


if __name__ == "__main__":
    # Synthetic dims (vectorizer vocab size / label count are not available in-script).
    # TODO(synk): real input_dim = len(vectorizer.get_feature_names_out()),
    #             output_dim = len(label_encoder.classes_) come from pickled sklearn
    #             objects and cannot be loaded here.
    batch = 8
    input_dim = 32      # stands in for the TF-IDF vocab size
    hidden_dim = 128    # fixed by the module
    output_dim = 16     # stands in for the number of label classes

    key = jax.random.PRNGKey(0)
    kx, kp = jax.random.split(key)
    x = jax.random.normal(kx, (batch, input_dim), jnp.float32)
    w1, b1, w2, b2 = init_params(kp, input_dim, hidden_dim, output_dim)

    out = travel_model_forward(x, w1, b1, w2, b2)
    out = jax.block_until_ready(out)

    # Reference with matching bf16-matmul / f32-accumulate precision.
    bf = jnp.bfloat16
    h_ref = jnp.maximum(
        jnp.dot(x.astype(bf), w1.astype(bf), preferred_element_type=jnp.float32) + b1,
        0.0,
    )
    ref = (
        jnp.dot(h_ref.astype(bf), w2.astype(bf), preferred_element_type=jnp.float32)
        + b2
    )
    assert out.shape == (batch, output_dim)
    assert jnp.allclose(out, ref, atol=2e-3, rtol=2e-3), (
        float(jnp.max(jnp.abs(out - ref)))
    )
    # Loose sanity check against the pure-f32 math as well.
    ref_f32 = jnp.maximum(x @ w1 + b1, 0.0) @ w2 + b2
    assert jnp.allclose(out, ref_f32, atol=3e-2, rtol=3e-2)

    print("KERNEL_OK")
</pallas_src>

<mosaic_0001>
module attributes {stable_mosaic.version = 11 : i64} {
  func.func @travel_mlp_kernel(%arg0: i32, %arg1: i32, %arg2: memref<8x128xbf16, #tpu.memory_space<vmem>>, %arg3: memref<128x128xbf16, #tpu.memory_space<vmem>>, %arg4: memref<1x128xf32, #tpu.memory_space<vmem>>, %arg5: memref<128x128xbf16, #tpu.memory_space<vmem>>, %arg6: memref<1x128xf32, #tpu.memory_space<vmem>>, %arg7: memref<8x128xf32, #tpu.memory_space<vmem>>, %arg8: memref<8x128xf32, #tpu.memory_space<vmem>>) attributes {dimension_semantics = [#tpu.dimension_semantics<parallel>, #tpu.dimension_semantics<arbitrary>], iteration_bounds = array<i64: 1, 1>, scalar_prefetch = 0 : i64, scratch_operands = 1 : i64, tpu.core_type = #tpu.core_type<tc>, window_params = [{transform_indices = @transform_0, window_bounds = array<i64: 8, 128>}, {transform_indices = @transform_1, window_bounds = array<i64: 128, 128>}, {pipeline_mode = #tpu.pipeline_mode<synchronous>, transform_indices = @transform_2, window_bounds = array<i64: 1, 128>}, {pipeline_mode = #tpu.pipeline_mode<synchronous>, transform_indices = @transform_3, window_bounds = array<i64: 128, 128>}, {pipeline_mode = #tpu.pipeline_mode<synchronous>, transform_indices = @transform_4, window_bounds = array<i64: 1, 128>}, {transform_indices = @transform_5, window_bounds = array<i64: 8, 128>}]} {
    %c0_i32 = arith.constant 0 : i32
    %0 = arith.cmpi eq, %arg1, %c0_i32 : i32
    %1 = arith.extui %0 : i1 to i32
    %c0_i32_0 = arith.constant 0 : i32
    %2 = arith.cmpi ne, %1, %c0_i32_0 : i32
    scf.if %2 {
      %cst_10 = arith.constant 0.000000e+00 : f32
      %12 = vector.broadcast %cst_10 : f32 to vector<8x128xf32>
      %c0_11 = arith.constant 0 : index
      %c0_12 = arith.constant 0 : index
      %13 = vector.load %arg8[%c0_11, %c0_12] : memref<8x128xf32, #tpu.memory_space<vmem>>, vector<8x128xf32>
      tpu.vector_store %arg8[%c0_11, %c0_12], %12 {strides = array<i32>} : memref<8x128xf32, #tpu.memory_space<vmem>>, vector<8x128xf32>,
    } else {
    }
    %c0 = arith.constant 0 : index
    %c0_1 = arith.constant 0 : index
    %3 = vector.load %arg8[%c0, %c0_1] : memref<8x128xf32, #tpu.memory_space<vmem>>, vector<8x128xf32>
    %c0_2 = arith.constant 0 : index
    %c0_3 = arith.constant 0 : index
    %4 = vector.load %arg2[%c0_2, %c0_3] : memref<8x128xbf16, #tpu.memory_space<vmem>>, vector<8x128xbf16>
    %c0_4 = arith.constant 0 : index
    %c0_5 = arith.constant 0 : index
    %5 = vector.load %arg3[%c0_4, %c0_5] : memref<128x128xbf16, #tpu.memory_space<vmem>>, vector<128x128xbf16>
    %cst = arith.constant dense<0.000000e+00> : vector<8x128xf32>
    %6 = tpu.matmul %4, %5, %cst {dimension_numbers = #tpu.dot_dimension_numbers<[1], [0], [0], [1], [0, 0, 1, 1], [], []>} : vector<8x128xbf16>, vector<128x128xbf16>, vector<8x128xf32> -> vector<8x128xf32>
    %7 = arith.addf %3, %6 : vector<8x128xf32>
    %c0_6 = arith.constant 0 : index
    %c0_7 = arith.constant 0 : index
    %8 = vector.load %arg8[%c0_6, %c0_7] : memref<8x128xf32, #tpu.memory_space<vmem>>, vector<8x128xf32>
    tpu.vector_store %arg8[%c0_6, %c0_7], %7 {strides = array<i32>} : memref<8x128xf32, #tpu.memory_space<vmem>>, vector<8x128xf32>,
    %c0_i32_8 = arith.constant 0 : i32
    %9 = arith.cmpi eq, %arg1, %c0_i32_8 : i32
    %10 = arith.extui %9 : i1 to i32
    %c0_i32_9 = arith.constant 0 : i32
    %11 = arith.cmpi ne, %10, %c0_i32_9 : i32
    scf.if %11 {
      %c0_10 = arith.constant 0 : index
      %c0_11 = arith.constant 0 : index
      %12 = vector.load %arg8[%c0_10, %c0_11] : memref<8x128xf32, #tpu.memory_space<vmem>>, vector<8x128xf32>
      %c0_12 = arith.constant 0 : index
      %c0_13 = arith.constant 0 : index
      %13 = vector.load %arg4[%c0_12, %c0_13] : memref<1x128xf32, #tpu.memory_space<vmem>>, vector<1x128xf32>
      %14 = vector.broadcast %13 : vector<1x128xf32> to vector<8x128xf32>
      %15 = arith.addf %12, %14 : vector<8x128xf32>
      %cst_14 = arith.constant 0.000000e+00 : f32
      %16 = vector.broadcast %cst_14 : f32 to vector<8x128xf32>
      %17 = arith.maximumf %15, %16 : vector<8x128xf32>
      %18 = arith.truncf %17 : vector<8x128xf32> to vector<8x128xbf16>
      %c0_15 = arith.constant 0 : index
      %c0_16 = arith.constant 0 : index
      %19 = vector.load %arg5[%c0_15, %c0_16] : memref<128x128xbf16, #tpu.memory_space<vmem>>, vector<128x128xbf16>
      %cst_17 = arith.constant dense<0.000000e+00> : vector<8x128xf32>
      %20 = tpu.matmul %18, %19, %cst_17 {dimension_numbers = #tpu.dot_dimension_numbers<[1], [0], [0], [1], [0, 0, 1, 1], [], []>} : vector<8x128xbf16>, vector<128x128xbf16>, vector<8x128xf32> -> vector<8x128xf32>
      %c0_18 = arith.constant 0 : index
      %c0_19 = arith.constant 0 : index
      %21 = vector.load %arg6[%c0_18, %c0_19] : memref<1x128xf32, #tpu.memory_space<vmem>>, vector<1x128xf32>
      %22 = vector.broadcast %21 : vector<1x128xf32> to vector<8x128xf32>
      %23 = arith.addf %20, %22 : vector<8x128xf32>
      %c0_20 = arith.constant 0 : index
      %c0_21 = arith.constant 0 : index
      %24 = vector.load %arg7[%c0_20, %c0_21] : memref<8x128xf32, #tpu.memory_space<vmem>>, vector<8x128xf32>
      tpu.vector_store %arg7[%c0_20, %c0_21], %23 {strides = array<i32>} : memref<8x128xf32, #tpu.memory_space<vmem>>, vector<8x128xf32>,
    } else {
    }
    return
  }
  func.func @transform_0(%arg0: i32, %arg1: i32) -> (i32, i32) {
    %c0_i32 = arith.constant 0 : i32
    return %arg0, %arg1 : i32, i32
  }
  func.func @transform_1(%arg0: i32, %arg1: i32) -> (i32, i32) {
    %c0_i32 = arith.constant 0 : i32
    %c0_i32_0 = arith.constant 0 : i32
    return %arg1, %c0_i32 : i32, i32
  }
  func.func @transform_2(%arg0: i32, %arg1: i32) -> (i32, i32) {
    %c0_i32 = arith.constant 0 : i32
    %c0_i32_0 = arith.constant 0 : i32
    %c0_i32_1 = arith.constant 0 : i32
    return %c0_i32, %c0_i32_0 : i32, i32
  }
  func.func @transform_3(%arg0: i32, %arg1: i32) -> (i32, i32) {
    %c0_i32 = arith.constant 0 : i32
    %c0_i32_0 = arith.constant 0 : i32
    %c0_i32_1 = arith.constant 0 : i32
    return %c0_i32, %c0_i32_0 : i32, i32
  }
  func.func @transform_4(%arg0: i32, %arg1: i32) -> (i32, i32) {
    %c0_i32 = arith.constant 0 : i32
    %c0_i32_0 = arith.constant 0 : i32
    %c0_i32_1 = arith.constant 0 : i32
    return %c0_i32, %c0_i32_0 : i32, i32
  }
  func.func @transform_5(%arg0: i32, %arg1: i32) -> (i32, i32) {
    %c0_i32 = arith.constant 0 : i32
    %c0_i32_0 = arith.constant 0 : i32
    return %arg0, %c0_i32 : i32, i32
  }
}

</mosaic_0001>

<bundles_post_ra>
// kernel: travel_model_forward.1
= control target key start
LH: loop header
LB: loop body
LE: loop exit
PB: predicated region body
PF: predicated region fallthrough
CT: control target
= control target key end

     0   :  { %s416_s0 = inlined_call_operand.vmem [shape: bf16[8,128], index: 0, kind: input, shape index: {}]   ;;  %s417_s1 = inlined_call_operand.vmem [shape: bf16[128,128], index: 1, kind: input, shape index: {}]   ;;  %s418_s2 = inlined_call_operand.vmem [shape: f32[1,128], index: 2, kind: input, shape index: {}]   ;;  %s419_s3 = inlined_call_operand.vmem [shape: bf16[128,128], index: 3, kind: input, shape index: {}]   ;;  %s420_s4 = inlined_call_operand.vmem [shape: f32[1,128], index: 4, kind: input, shape index: {}]   ;;  %s421_s5 = inlined_call_operand.hbm [shape: f32[8,128], index: 5, kind: output, shape index: {}]  }
   0x1   :  { %v287_v0 = vld [vmem:[%s417_s1 + $0x38] sm:$0xff]  ;;  %v286_v1 = vld [vmem:[%s417_s1 + $0x30] sm:$0xff] }
   0x2   :  { %92 = vmatpush.bf16.msra.mxu0 %v287_v0  ;;  %v295_v2 = vld [vmem:[%s419_s3 + $0x38] sm:$0xff]  ;;  %v294_v3 = vld [vmem:[%s419_s3 + $0x30] sm:$0xff] }
   0x3   :  { %186 = vmatpush.bf16.msra.mxu1 %v295_v2 }
   0x4   :  { %10 = vsyncpa [#allocation4], 0  ;;  %v285_v4 = vld [vmem:[%s417_s1 + $0x28] sm:$0xff]  ;;  %v284_v6 = vld [vmem:[%s417_s1 + $0x20] sm:$0xff]  ;;  %s325_s29 = smov [#allocation3]  }
   0x5   :  { %v293_v5 = vld [vmem:[%s419_s3 + $0x28] sm:$0xff]  ;;  %v292_v7 = vld [vmem:[%s419_s3 + $0x20] sm:$0xff]  ;;  %v283_v8 = vld [vmem:[%s417_s1 + $0x18] sm:$0xff]  ;;  %s205_s30 = sshll.u32 %s325_s29, 4  ;;  %s206_s30 = int_to_ptr.vmem [resolvable:$true] %s205_s30 }
   0x6   :  { %93 = vmatpush.bf16.msra.mxu0 %v286_v1  ;;  %v291_v9 = vld [vmem:[%s419_s3 + $0x18] sm:$0xff]  ;;  %v282_v10 = vld [vmem:[%s417_s1 + $0x10] sm:$0xff]  ;;  %v281_v12 = vld [vmem:[%s417_s1 + $0x8] sm:$0xff] }
   0x7   :  { %187 = vmatpush.bf16.msra.mxu1 %v294_v3  ;;  %v290_v11 = vld [vmem:[%s419_s3 + $0x10] sm:$0xff]  ;;  %v280_v13 = vld [vmem:[%s417_s1] sm:$0xff]  ;;  %v289_v15 = vld [vmem:[%s419_s3 + $0x8] sm:$0xff] }
   0x8   :  { %v27_v14 = vld [vmem:[%s416_s0] sm:$0xf] }
   0x9   :  { %v288_v16 = vld [vmem:[%s419_s3] sm:$0xff]  ;;  %s207_s3 = sshll.u32 %s421_s5, 4  ;;  %s208_s3 = int_to_ptr.hbm [resolvable:$true] %s207_s3 }
   0xa   :  { %94 = vmatpush.bf16.msra.mxu0 %v285_v4  ;;  %v297_v17 = vld [vmem:[%s418_s2] ss:$0 sm:$0xff] }
   0xb   :  { %188 = vmatpush.bf16.msra.mxu1 %v293_v5  ;;  %v298_v23 = vld [vmem:[%s420_s4] ss:$0 sm:$0xff] }
   0xe   :  { %95 = vmatpush.bf16.msra.mxu0 %v284_v6 }
   0xf   :  { %189 = vmatpush.bf16.msra.mxu1 %v292_v7 }
  0x12   :  { %96 = vmatpush.bf16.msra.mxu0 %v283_v8 }
  0x13   :  { %190 = vmatpush.bf16.msra.mxu1 %v291_v9 }
  0x16   :  { %97 = vmatpush.bf16.msra.mxu0 %v282_v10 }
  0x17   :  { %191 = vmatpush.bf16.msra.mxu1 %v290_v11 }
  0x1a   :  { %98 = vmatpush.bf16.msra.mxu0 %v281_v12 }
  0x1b   :  { %192 = vmatpush.bf16.msra.mxu1 %v289_v15 }
  0x1e   :  { %99 = vmatpush.bf16.msra.mxu0 %v280_v13 }
  0x1f   :  { %193 = vmatpush.bf16.msra.mxu1 %v288_v16 }
  0x21   :  { %100 = vmatmul.bf16.vlgmr.msra.gmra.mxu0 %v27_v14 }
  0x9e   :  { %v101_v18 = vpop.f32.mrf.mxu0 }
  0x9f   :  { %v115_v19 = vadd.f32 %v297_v17, %v101_v18 }
  0xa1   :  { %v116_v20 = vmax.f32 %v115_v19, 0.0 }
  0xa3   :  { %v117_v21 = vpack.c.bf16 %v116_v20, %v116_v20 }
  0xa5   :  { %194 = vmatmul.bf16.vlgmr.msra.gmra.mxu1 %v117_v21 }
  0xa6   :  { %v103_v22 = vpop.f32.mrf.mxu0 }
 0x122   :  { %v195_v24 = vpop.f32.mrf.mxu1 }
 0x123   :  { %v196_v25 = vadd.f32 %v298_v23, %v195_v24 }
 0x125   :  { %199 = vst [vmem:[#allocation3] sm:$0xff] %v196_v25 }
 0x126   :  { %210 = dma.vmem_to_hbm [thread:$0]  %s206_s30, 128, %s208_s3, [#allocation4]  }
 0x12a   :  { %v197_v26 = vpop.f32.mrf.mxu1 }
 0x12b   :  { %323 = dma.done.wait [#allocation4], 128  }
 0x12c   :  { %324 = vsyncadd [#allocation4], 4294967168 }
 0x12d   :  { %215 = vsyncpa [#allocation4], 1 }

</bundles_post_ra>
